<compile_context>
chip_gen: v7x
topology: tpu7x:2x2x1
jax: 0.10.0
libtpu: 0.0.40
codegen_flags: <defaults>
</compile_context>

<pallas_src>
import numpy as np
import jax
import jax.numpy as jnp
from jax.experimental import pallas as pl
from jax.experimental.pallas import tpu as pltpu


# ----------------------------------------------------------------------------
# Operator construction (parameter/glue setup in plain numpy, done once on host)
# ----------------------------------------------------------------------------
def adaptive_avg_pool_matrix(in_size, out_size):
    """(out_size, in_size) matrix reproducing nn.AdaptiveAvgPool1d semantics."""
    P = np.zeros((out_size, in_size), dtype=np.float64)
    for i in range(out_size):
        start = (i * in_size) // out_size                      # floor(i * in / out)
        end = -((-(i + 1) * in_size) // out_size)              # ceil((i+1) * in / out)
        P[i, start:end] = 1.0 / (end - start)
    return P


def bilinear_upsample_matrix(in_size, out_size):
    """(out_size, in_size) matrix reproducing F.interpolate(mode='bilinear',
    align_corners=True) along one axis."""
    U = np.zeros((out_size, in_size), dtype=np.float64)
    if in_size == 1:
        U[:, 0] = 1.0
        return U
    scale = (in_size - 1) / (out_size - 1) if out_size > 1 else 0.0
    for o in range(out_size):
        src = o * scale
        i0 = min(int(np.floor(src)), in_size - 1)
        i1 = min(i0 + 1, in_size - 1)
        frac = src - i0
        U[o, i0] += 1.0 - frac
        U[o, i1] += frac
    return U


def build_stage_operators(H, W, pool_sizes):
    """Per stage: combined spatial operator kron(Mh, Mw)^T of shape (HW, HW)."""
    ops = []
    for size in pool_sizes:
        Ph = adaptive_avg_pool_matrix(H, size)
        Pw = adaptive_avg_pool_matrix(W, size)
        Uh = bilinear_upsample_matrix(size, H)
        Uw = bilinear_upsample_matrix(size, W)
        Mh = Uh @ Ph                                           # (H, H)
        Mw = Uw @ Pw                                           # (W, W)
        ops.append(np.kron(Mh, Mw).T.astype(np.float32))       # (HW, HW)
    return jnp.asarray(np.stack(ops, axis=0))                  # (S, HW, HW)


def build_blockdiag_weights(weights, N):
    """weights: (S, C, C) 1x1-conv weights -> (S, N*C, N*C) block-diagonal
    channel-mix operators acting on a batch-stacked (N*C, HW) activation."""
    S, C, _ = weights.shape
    eye_n = np.eye(N, dtype=np.float32)
    w_np = np.asarray(weights, dtype=np.float32)
    blk = np.stack([np.kron(eye_n, w_np[s]) for s in range(S)], axis=0)
    return jnp.asarray(blk)                                    # (S, N*C, N*C)


# ----------------------------------------------------------------------------
# Pallas kernel: one grid step per pyramid stage; whole batch processed per step
# ----------------------------------------------------------------------------
def pyramid_stage_kernel(x_ref, w_ref, m_ref, o_ref):
    # x_ref: (NC, HW)      batch-stacked input (constant block -> DMA'd once)
    # w_ref: (1, NC, NC)   block-diag 1x1-conv weight of current stage
    # m_ref: (1, HW, HW)   combined pool + bilinear-upsample operator (transposed)
    # o_ref: (1, NC, HW)
    x = x_ref[...]                                             # (NC, HW)
    w = w_ref[0]                                               # (NC, NC)
    m = m_ref[0]                                               # (HW, HW)
    # 1x1 conv (per-pixel channel mix) commutes with the purely-linear spatial op.
    conv = jnp.dot(w, x, preferred_element_type=jnp.float32)   # (NC, HW)
    out = jnp.dot(conv, m, preferred_element_type=jnp.float32) # pool + bilinear up
    o_ref[0] = out.astype(o_ref.dtype)


def pyramid_pooling_forward(x, weights, pool_sizes):
    """x: (N, C, H, W) float32, weights: (S, C, C) float32 (1x1 conv, no bias).
    Returns (N, S*C, H, W), matching torch.cat([stage(x) for stage in stages], dim=1)."""
    N, C, H, W = x.shape
    S = len(pool_sizes)
    HW = H * W
    NC = N * C

    m_all = build_stage_operators(H, W, pool_sizes)            # (S, HW, HW)
    w_blk = build_blockdiag_weights(weights, N)                # (S, NC, NC)
    x_flat = x.reshape(NC, HW)                                 # batch stacked on rows

    flops = 2 * S * (NC * NC * HW + NC * HW * HW)
    bytes_accessed = 4 * (x_flat.size + m_all.size + w_blk.size + S * NC * HW)

    out = pl.pallas_call(
        pyramid_stage_kernel,
        out_shape=jax.ShapeDtypeStruct((S, NC, HW), x.dtype),
        grid_spec=pltpu.PrefetchScalarGridSpec(
            num_scalar_prefetch=0,
            grid=(S,),
            in_specs=[
                # Constant block index -> x is DMA'd once for the whole call.
                pl.BlockSpec((NC, HW), lambda s: (0, 0)),
                pl.BlockSpec((1, NC, NC), lambda s: (s, 0, 0)),
                pl.BlockSpec((1, HW, HW), lambda s: (s, 0, 0)),
            ],
            out_specs=pl.BlockSpec((1, NC, HW), lambda s: (s, 0, 0)),
        ),
        compiler_params=pltpu.CompilerParams(
            dimension_semantics=("parallel",)),
        cost_estimate=pl.CostEstimate(
            flops=flops, transcendentals=0, bytes_accessed=bytes_accessed),
    )(x_flat, w_blk, m_all)

    # (S, N, C, H, W) -> (N, S, C, H, W) -> (N, S*C, H, W): channel order =
    # stage-major, matching torch.cat along dim=1.
    out = out.reshape(S, N, C, H, W).transpose(1, 0, 2, 3, 4).reshape(N, S * C, H, W)
    return out


# ----------------------------------------------------------------------------
# Pure-JAX reference (faithful stage-by-stage: pool -> conv -> upsample -> concat)
# ----------------------------------------------------------------------------
def reference_forward(x, weights, pool_sizes):
    N, C, H, W = x.shape
    outs = []
    for s_idx, size in enumerate(pool_sizes):
        Ph = jnp.asarray(adaptive_avg_pool_matrix(H, size), jnp.float32)
        Pw = jnp.asarray(adaptive_avg_pool_matrix(W, size), jnp.float32)
        Uh = jnp.asarray(bilinear_upsample_matrix(size, H), jnp.float32)
        Uw = jnp.asarray(bilinear_upsample_matrix(size, W), jnp.float32)
        pooled = jnp.einsum('ih,nchw,jw->ncij', Ph, x, Pw)     # AdaptiveAvgPool2d(size)
        conved = jnp.einsum('oc,ncij->noij', weights[s_idx], pooled)  # 1x1 conv, no bias
        up = jnp.einsum('yi,noij,xj->noyx', Uh, conved, Uw)    # bilinear, align_corners=True
        outs.append(up)
    return jnp.concatenate(outs, axis=1)


if __name__ == "__main__":
    pool_sizes = (1, 2, 3, 6)
    N, C, H, W = 2, 4, 16, 16
    S = len(pool_sizes)

    key = jax.random.PRNGKey(0)
    kx, kw = jax.random.split(key)
    x = jax.random.normal(kx, (N, C, H, W), dtype=jnp.float32)
    # Deterministic synthetic 1x1-conv weights (one (C, C) matrix per pyramid stage).
    w_all = jax.random.normal(kw, (S, C, C), dtype=jnp.float32) / np.sqrt(C)

    out = pyramid_pooling_forward(x, w_all, pool_sizes)
    out = jax.block_until_ready(out)

    ref = reference_forward(x, w_all, pool_sizes)
    assert out.shape == (N, S * C, H, W), out.shape
    np.testing.assert_allclose(np.asarray(out), np.asarray(ref), rtol=1e-4, atol=1e-4)
    print("KERNEL_OK")
</pallas_src>

<mosaic_0001>
module attributes {stable_mosaic.version = 11 : i64} {
  func.func @pyramid_stage_kernel(%arg0: i32, %arg1: memref<8x256xf32, #tpu.memory_space<vmem>>, %arg2: memref<1x8x8xf32, #tpu.memory_space<vmem>>, %arg3: memref<1x256x256xf32, #tpu.memory_space<vmem>>, %arg4: memref<1x8x256xf32, #tpu.memory_space<vmem>>) attributes {dimension_semantics = [#tpu.dimension_semantics<parallel>], iteration_bounds = array<i64: 4>, scalar_prefetch = 0 : i64, scratch_operands = 0 : i64, tpu.core_type = #tpu.core_type<tc>, window_params = [{pipeline_mode = #tpu.pipeline_mode<synchronous>, transform_indices = @transform_0, window_bounds = array<i64: 8, 256>}, {transform_indices = @transform_1, window_bounds = array<i64: 1, 8, 8>}, {transform_indices = @transform_2, window_bounds = array<i64: 1, 256, 256>}, {transform_indices = @transform_3, window_bounds = array<i64: 1, 8, 256>}]} {
    %c0 = arith.constant 0 : index
    %c0_0 = arith.constant 0 : index
    %0 = vector.load %arg1[%c0, %c0_0] : memref<8x256xf32, #tpu.memory_space<vmem>>, vector<8x256xf32>
    %c0_1 = arith.constant 0 : index
    %c0_2 = arith.constant 0 : index
    %c0_3 = arith.constant 0 : index
    %1 = vector.load %arg2[%c0_1, %c0_2, %c0_3] : memref<1x8x8xf32, #tpu.memory_space<vmem>>, vector<1x8x8xf32>
    %2 = vector.shape_cast %1 : vector<1x8x8xf32> to vector<8x8xf32>
    %c0_4 = arith.constant 0 : index
    %c0_5 = arith.constant 0 : index
    %c0_6 = arith.constant 0 : index
    %3 = vector.load %arg3[%c0_4, %c0_5, %c0_6] : memref<1x256x256xf32, #tpu.memory_space<vmem>>, vector<1x256x256xf32>
    %4 = vector.shape_cast %3 : vector<1x256x256xf32> to vector<256x256xf32>
    %cst = arith.constant dense<0.000000e+00> : vector<8x256xf32>
    %5 = tpu.matmul %2, %0, %cst {dimension_numbers = #tpu.dot_dimension_numbers<[1], [0], [0], [1], [0, 0, 1, 1], [], []>} : vector<8x8xf32>, vector<8x256xf32>, vector<8x256xf32> -> vector<8x256xf32>
    %cst_7 = arith.constant dense<0.000000e+00> : vector<8x256xf32>
    %6 = tpu.matmul %5, %4, %cst_7 {dimension_numbers = #tpu.dot_dimension_numbers<[1], [0], [0], [1], [0, 0, 1, 1], [], []>} : vector<8x256xf32>, vector<256x256xf32>, vector<8x256xf32> -> vector<8x256xf32>
    %c0_8 = arith.constant 0 : index
    %c0_9 = arith.constant 0 : index
    %c0_10 = arith.constant 0 : index
    %7 = vector.load %arg4[%c0_8, %c0_9, %c0_10] : memref<1x8x256xf32, #tpu.memory_space<vmem>>, vector<1x8x256xf32>
    %8 = vector.shape_cast %7 : vector<1x8x256xf32> to vector<8x256xf32>
    %9 = vector.shape_cast %6 : vector<8x256xf32> to vector<1x8x256xf32>
    tpu.vector_store %arg4[%c0_8, %c0_9, %c0_10], %9 {strides = array<i32>} : memref<1x8x256xf32, #tpu.memory_space<vmem>>, vector<1x8x256xf32>,
    return
  }
  func.func @transform_0(%arg0: i32) -> (i32, i32) {
    %c0_i32 = arith.constant 0 : i32
    %c0_i32_0 = arith.constant 0 : i32
    %c0_i32_1 = arith.constant 0 : i32
    return %c0_i32, %c0_i32_0 : i32, i32
  }
  func.func @transform_1(%arg0: i32) -> (i32, i32, i32) {
    %c0_i32 = arith.constant 0 : i32
    %c0_i32_0 = arith.constant 0 : i32
    %c0_i32_1 = arith.constant 0 : i32
    return %arg0, %c0_i32, %c0_i32_0 : i32, i32, i32
  }
  func.func @transform_2(%arg0: i32) -> (i32, i32, i32) {
    %c0_i32 = arith.constant 0 : i32
    %c0_i32_0 = arith.constant 0 : i32
    %c0_i32_1 = arith.constant 0 : i32
    return %arg0, %c0_i32, %c0_i32_0 : i32, i32, i32
  }
  func.func @transform_3(%arg0: i32) -> (i32, i32, i32) {
    %c0_i32 = arith.constant 0 : i32
    %c0_i32_0 = arith.constant 0 : i32
    %c0_i32_1 = arith.constant 0 : i32
    return %arg0, %c0_i32, %c0_i32_0 : i32, i32, i32
  }
}

</mosaic_0001>

<bundles_post_ra>
// kernel: tpu_custom_call.1
= control target key start
LH: loop header
LB: loop body
LE: loop exit
PB: predicated region body
PF: predicated region fallthrough
CT: control target
= control target key end

     0   :  { %8 = vsyncpa [#allocation3], 0  ;;  %s1211_s0 = inlined_call_operand.hbm [shape: f32[8,256], index: 0, kind: input, shape index: {}]   ;;  %s1212_s1 = inlined_call_operand.hbm [shape: f32[4,8,8], index: 1, kind: input, shape index: {}]   ;;  %s1213_s2 = inlined_call_operand.hbm [shape: f32[4,256,256], index: 2, kind: input, shape index: {}]   ;;  %s1214_s3 = inlined_call_operand.hbm [shape: f32[4,8,256], index: 3, kind: output, shape index: {}]  }
   0x1   :  { %9 = vsyncpa [#allocation6], 0 }
   0x2   :  { %11 = vsyncpa [#allocation6 + $0x1], 0 }
   0x3   :  { %12 = vsyncpa [#allocation4], 0 }
   0x4   :  { %14 = vsyncpa [#allocation4 + $0x1], 0  ;;  %s906_s12 = smov 0   ;;  %s908_s13 = smov 0  }
   0x5   :  { %s910_s14 = smov 0   ;;  %s912_s15 = smov 0  }
   0x6 LB: > { %s927_s16 = sadd.s32 1, %s877_s15   ;;  %s48_s17 = sadd.s32 1, %s873_s14  ;;  %s877_s15 = sphi %s912_s15, %s1234_s15   ;;  %s873_s14 = sphi %s910_s14, %s1233_s14   ;;  %s869_s13 = sphi %s908_s13, %s1232_s13   ;;  %s865_s12 = sphi %s906_s12, %s1231_s12  }
   0x7   : > { %s45_s18 = ssub.s32 %s877_s15, %s927_s16  ;;  %p55_p0 = scmp.ne.s32.totalorder %s873_s14, %s869_s13 }
   0x8   : > { %p46_p1 = scmp.eq.s32.totalorder %s45_s18, 0  ;;  %p56_p2 = scmp.eq.s32.totalorder %s877_s15, 0 }
   0x9   : > { %p680_p3 = scmp.lt.s32.totalorder %s877_s15, 4  ;;  %s148_s20 = sand.u32 1, %s877_s15  }
   0xa   : > { %s937_s19 = scalar_select %p46_p1, %s873_s14, %s48_s17  }
   0xb   : > { %p57_p4 = por %p56_p2, %p55_p0  ;;  %s150_s21 = sand.u32 1, %s873_s14  }
   0xc   : > { %s572_s22 = sshll.u32 %s150_s21, 3  ;;  %s573_s23 = sshll.u32 %s877_s15, 7 }
   0xd   : > { %s948_s26 = scalar_lea.hbm %s1212_s1, %s573_s23  ;;  %s152_s27 = scalar_lea.vmem [#allocation5], %s572_s22 }
   0xe   : > { %s159_s28 = sshll.u32 %s152_s27, 4  ;;  %p950_p5 = pnand %p680_p3, %p57_p4  ;;  %s954_s28 = int_to_ptr.vmem [resolvable:$true] %s159_s28 }
   0xf   : > { %s956_s30 = sshll.u32 %s150_s21, 9  ;;  %s958_s4 = scalar_lea.sflag [#allocation6], %s148_s20 }
  0x10   : > { %s719_s5 = scalar_lea.hbm %s948_s26, 128  ;;  %p721_p7 = pneg %p950_p5 }
  0x11   : > { %p720_p6 = scmp.ne.s32.totalorder %s948_s26, %s719_s5  ;;  %s724_s8 = scalar_lea.hbm %s1212_s1, 512 }
  0x12   : > { %p725_p10 = scmp.lt.u32.totalorder %s948_s26, %s1212_s1  ;;  %p726_p11 = scmp.lt.u32.totalorder %s724_s8, %s719_s5 }
  0x13   : > { %p722_p8 = pnand %p721_p7, %p720_p6  ;;  %p728_p13 = scmp.lt.u32.totalorder %s719_s5, %s948_s26 }
  0x14   : > { %p727_p12 = por %p726_p11, %p725_p10 }
  0x15   : > { %p723_p9 = pneg %p722_p8 }
  0x16   : > { %p729_p1 = por %p728_p13, %p727_p12 }
  0x18   : > { %p730_p2 = pnand %p729_p1, %p723_p9 }
  0x1a   : > { %733 = shalt.err (!%p730_p2)
}
  0x1b   : > { %s734_s11 = scalar_lea.vmem %s954_s28, 128  ;;  %s879_s17 = smov [#allocation5]  }
  0x1c   : > { %p735_p3 = scmp.ne.s32.totalorder %s954_s28, %s734_s11  ;;  %s739_s18 = sshll.u32 %s879_s17, 4  ;;  %s740_s18 = int_to_ptr.vmem [resolvable:$false] %s739_s18 }
  0x1d   : > { %s741_s20 = scalar_lea.vmem %s740_s18, 256  ;;  %p742_p8 = scmp.lt.s32.totalorder %s954_s28, %s740_s18 }
  0x1e   : > { %p737_p4 = pnand %p735_p3, %p721_p7  ;;  %p743_p10 = scmp.lt.s32.totalorder %s741_s20, %s734_s11 }
  0x20   : > { %p738_p6 = pneg %p737_p4  ;;  %p744_p11 = por %p743_p10, %p742_p8 }
  0x22   : > { %p745_p12 = pnand %p744_p11, %p738_p6 }
  0x24   : > { %748 = shalt.err (!%p745_p12)
}
  0x25   : > { %671 = dma.hbm_to_vmem [thread:$0]  (!%p950_p5), %s948_s26, 128, %s954_s28, %s958_s4  }
  0x26   : > { %s170_s21 = scalar_lea.vmem [#allocation7], %s956_s30  ;;  %s988_s23 = sadd.s32 4294967295, %s877_s15  }
  0x27   : > { %s177_s22 = sshll.u32 %s170_s21, 4  ;;  %s568_s24 = sadd.s32 4294967294, %s877_s15   ;;  %s1015_s22 = int_to_ptr.vmem [resolvable:$true] %s177_s22 }
  0x28   : > { %p61_p9 = scmp.ne.s32.totalorder %s869_s13, %s865_s12  ;;  %p1215_p13 = scmp.eq.s32.totalorder %s988_s23, 0 }
  0x29   : > { %p111_p1 = scmp.eq.s32.totalorder %s988_s23, 3  ;;  %p117_p2 = scmp.eq.s32.totalorder %s568_s24, 3 }
  0x2a   : > { %p997_p3 = por %p1215_p13, %p61_p9  ;;  %p569_p4 = scmp.ge.s32.totalorder %s877_s15, 1 }
  0x2b   : > { %p1005_p6 = por %p111_p1, %p55_p0  ;;  %p1009_p8 = por %p117_p2, %p61_p9 }
  0x2c   : > { %s1220_s25 = scalar_select %p997_p3, 1, 0 }
  0x2d   : > { %s1221_s26 = scalar_select %p1005_p6, 1, 0 }
  0x2e   : > { %s1222_s27 = scalar_select %p1009_p8, 1, 0 }
  0x2f   : > { %p124_p10 = scmp.lt.s32.totalorder %s877_s15, 5  ;;  %s588_s28 = sshll.u32 %s877_s15, 13 }
  0x30   : > { %s880_s5 = smov [#allocation2]   ;;  %s1024_s9 = scalar_lea.hbm %s1213_s2, %s588_s28 }
  0x31   : > { %p1017_p11 = pnand %p569_p4, %p124_p10  ;;  %s137_s6 = sshll.u32 %s880_s5, 4  ;;  %s1028_s6 = int_to_ptr.vmem [resolvable:$true] %s137_s6 }
  0x32   : > { %s749_s11 = scalar_lea.hbm %s1024_s9, 8192  ;;  %s754_s20 = scalar_lea.hbm %s1213_s2, 32768 }
  0x33   : > { %s1223_s30 = scalar_select %p1017_p11, 1, 0 }
  0x34   : > { %p664_p0 = pneg %p1017_p11  ;;  %p750_p9 = scmp.ne.s32.totalorder %s1024_s9, %s749_s11 }
  0x35   : > { %p755_p4 = scmp.lt.u32.totalorder %s1024_s9, %s1213_s2  ;;  %p756_p10 = scmp.lt.u32.totalorder %s754_s20, %s749_s11 }
  0x36   : > { %p1032_p12 = pnand %p664_p0, %p1215_p13  ;;  %p752_p1 = pnand %p750_p9, %p721_p7 }
  0x37   : > { %p757_p8 = por %p756_p10, %p755_p4  ;;  %p758_p0 = scmp.lt.u32.totalorder %s749_s11, %s1024_s9 }
  0x38   : > { %p753_p2 = pneg %p752_p1 }
  0x39   : > { %p759_p13 = por %p758_p0, %p757_p8 }
  0x3b   : > { %p760_p6 = pnand %p759_p13, %p753_p2 }
  0x3d   : > { %763 = shalt.err (!%p760_p6)
}
  0x3e   : > { %s764_s28 = scalar_lea.vmem %s1015_s22, 8192  ;;  %s881_s5 = smov [#allocation7]  }
  0x3f   : > { %p765_p9 = scmp.ne.s32.totalorder %s1015_s22, %s764_s28  ;;  %s769_s7 = sshll.u32 %s881_s5, 4  ;;  %s770_s7 = int_to_ptr.vmem [resolvable:$false] %s769_s7 }
  0x40   : > { %s771_s8 = scalar_lea.vmem %s770_s7, 16384  ;;  %p772_p11 = scmp.lt.s32.totalorder %s1015_s22, %s770_s7 }
  0x41   : > { %p767_p1 = pnand %p765_p9, %p721_p7  ;;  %p773_p4 = scmp.lt.s32.totalorder %s771_s8, %s764_s28 }
  0x43   : > { %p768_p3 = pneg %p767_p1  ;;  %p774_p10 = por %p773_p4, %p772_p11 }
  0x45   : > { %p775_p8 = pnand %p774_p10, %p768_p3 }
  0x47   : > { %778 = shalt.err (!%p775_p8)
}
  0x48   : > { %s882_s11 = smov 256   ;;  %s883_s17 = smov 16  }
  0x49   : > { %674 = dma.hbm_to_vmem [thread:$0]  (!%p950_p5), %s1024_s9, 8192, %s1015_s22, %s958_s4, %s882_s11, %s882_s11, %s883_s17  }
  0x4a   : > { %s779_s21 = scalar_lea.hbm %s1211_s0, 256  ;;  %p781_p13 = pneg %p1032_p12 }
  0x4b   : > { %p780_p7 = scmp.ne.s32.totalorder %s1211_s0, %s779_s21  ;;  %p786_p11 = scmp.lt.u32.totalorder %s779_s21, %s1211_s0 }
  0x4d   : > { %p782_p3 = pnand %p781_p13, %p780_p7 }
  0x4f   : > { %p783_p6 = pneg %p782_p3 }
  0x51   : > { %p788_p2 = pnand %p786_p11, %p783_p6 }
  0x53   : > { %791 = shalt.err (!%p788_p2)
}
  0x54   : > { %s792_s29 = scalar_lea.vmem %s1028_s6, 256  ;;  %p800_p1 = scmp.lt.s32.totalorder %s1028_s6, %s1028_s6 }
  0x55   : > { %p793_p5 = scmp.ne.s32.totalorder %s1028_s6, %s792_s29  ;;  %p801_p4 = scmp.lt.s32.totalorder %s792_s29, %s792_s29 }
  0x57   : > { %p795_p0 = pnand %p793_p5, %p781_p13  ;;  %p802_p10 = por %p801_p4, %p800_p1 }
  0x59   : > { %p796_p9 = pneg %p795_p0 }
  0x5b   : > { %p803_p8 = pnand %p802_p10, %p796_p9 }
  0x5d   : > { %806 = shalt.err (!%p803_p8)
}
  0x5e   : > { %667 = dma.hbm_to_vmem [thread:$0]  (!%p1032_p12), %s1211_s0, 256, %s1028_s6, [#allocation3]  }
  0x5f   : > { %p1225_p7 = scmp.ne.s32.totalorder %s1223_s30, 0 }
  0x60   : > { %p1226_p3 = scmp.eq.s32.totalorder (!%p1225_p7), %s988_s23, 0 }
  0x61   : > { %189 = sbr.rel (%p1225_p7) target bundleno = 554 (0x22a), region = 32 }
  0x68   : > { %852 = dma.done.wait (%p1226_p3), [#allocation3], 256   ;;  %p1227_p13 = pmov %p1226_p3 }
  0x69   : > { %s195_s9 = sand.u32 1, %s988_s23   ;;  %s1089_s8 = sand.u32 1, %s869_s13  }
  0x6a   : > { %854 = vsyncadd (%p1227_p13), [#allocation3], 4294967040  ;;  %s579_s10 = sshll.u32 %s1089_s8, 3  ;;  %s196_s11 = scalar_lea.sflag [#allocation6], %s195_s9 }
  0x6b   : > { %s199_s17 = scalar_lea.vmem [#allocation5], %s579_s10  ;;  %p1228_p12 = scmp.ne.s32.totalorder %s1220_s25, 0 }
  0x6d   : > { %856 = dma.done.wait (%p1228_p12), %s196_s11, 8320  }
  0x6e   : > { %858 = vsyncadd (%p1228_p12), %s196_s11, 4294958976  ;;  %v884_v0 = vmov 0.0   ;;  %s580_s30 = sshll.u32 %s1089_s8, 9  ;;  %v237_v1 = vld [vmem:[#allocation2 + $0x8] sm:$0xff]  ;;  %v236_v2 = vld [vmem:[#allocation2] sm:$0xff]  ;;  %vm303_vm0 = vcmask 64512  }
  0x6f   : > { %371 = vmatprep.mubr.f32.mxu0 %v884_v0  ;;  %v238_v3 = vld [vmem:[%s199_s17] sm:$0xff]  ;;  %307 = vmatprep.subr.mxu0 %v237_v1  ;;  %s1097_s6 = scalar_lea.vmem [#allocation7], %s580_s30  ;;  %s581_s25 = sshll.u32 %s1089_s8, 4 }
  0x70   : > { %v240_v4 = vld [vmem:[%s1097_s6 + $0x8] sm:$0xff]  ;;  %v242_v5 = vld [vmem:[%s1097_s6 + $0x18] sm:$0xff]  ;;  %v239_v6 = vld [vmem:[%s1097_s6] sm:$0xff]  ;;  %308 = vmatpush1.msra.mxu0 %v236_v2  ;;  %s235_s18 = scalar_lea.vmem [#allocation8], %s581_s25  ;;  %s589_s21 = sshll.u32 %s988_s23, 8 }
  0x71   : > { %v590_v7 = vpack.c.bf16 %v242_v5, %v240_v4  ;;  %v241_v8 = vld [vmem:[%s1097_s6 + $0x10] sm:$0xff]  ;;  %v244_v9 = vld [vmem:[%s1097_s6 + $0x28] sm:$0xff]  ;;  %v246_v10 = vld [vmem:[%s1097_s6 + $0x38] sm:$0xff]  ;;  %582 = vmatmul.mubr.msk.f32.vlgmr.msra.gmra.mrb[0].mxu0 %vm303_vm0, %v238_v3  ;;  %s466_s20 = sshll.u32 %s235_s18, 4  ;;  %s1170_s28 = scalar_lea.hbm %s1214_s3, %s589_s21  ;;  %s1165_s20 = int_to_ptr.vmem [resolvable:$true] %s466_s20 }
  0x72   : > { %v592_v11 = vpack.c.bf16 %v241_v8, %v239_v6  ;;  %v594_v12 = vpack.c.bf16 %v246_v10, %v244_v9  ;;  %v243_v13 = vld [vmem:[%s1097_s6 + $0x20] sm:$0xff]  ;;  %v245_v14 = vld [vmem:[%s1097_s6 + $0x30] sm:$0xff]  ;;  %v248_v15 = vld [vmem:[%s1097_s6 + $0x48] sm:$0xff]  ;;  %s452_s7 = scalar_lea.sflag [#allocation4], %s1089_s8  ;;  %s807_s29 = scalar_lea.vmem %s1165_s20, 256 }
  0x73   : > { %591 = vmatprep.subr.bf16.mxu1 %v590_v7  ;;  %v250_v16 = vld [vmem:[%s1097_s6 + $0x58] sm:$0xff]  ;;  %v596_v17 = vpack.c.bf16 %v245_v14, %v243_v13  ;;  %v247_v19 = vld [vmem:[%s1097_s6 + $0x40] sm:$0xff]  ;;  %v249_v20 = vld [vmem:[%s1097_s6 + $0x50] sm:$0xff]  ;;  %p808_p6 = scmp.ne.s32.totalorder %s1165_s20, %s807_s29  ;;  %p1229_p11 = scmp.ne.s32.totalorder %s1221_s26, 0 }
  0x74   : > { %593 = vmatpush1.bf16.msra.mxu1 %v592_v11  ;;  %v598_v18 = vpack.c.bf16 %v250_v16, %v248_v15  ;;  %v252_v21 = vld [vmem:[%s1097_s6 + $0x68] sm:$0xff]  ;;  %v254_v22 = vld [vmem:[%s1097_s6 + $0x78] sm:$0xff]  ;;  %v600_v23 = vpack.c.bf16 %v249_v20, %v247_v19  ;;  %v251_v25 = vld [vmem:[%s1097_s6 + $0x60] sm:$0xff]  ;;  %s885_s23 = smov [#allocation8]  }
  0x75   : > { %595 = vmatprep.subr.bf16.mxu1 %v594_v12  ;;  %v602_v24 = vpack.c.bf16 %v254_v22, %v252_v21  ;;  %v253_v26 = vld [vmem:[%s1097_s6 + $0x70] sm:$0xff]  ;;  %v256_v27 = vld [vmem:[%s1097_s6 + $0x88] sm:$0xff]  ;;  %v258_v28 = vld [vmem:[%s1097_s6 + $0x98] sm:$0xff]  ;;  %p809_p2 = pnand %p808_p6, %p1229_p11  ;;  %s811_s4 = sshll.u32 %s885_s23, 4  ;;  %s812_s4 = int_to_ptr.vmem [resolvable:$false] %s811_s4 }
  0x76   : > { %v604_v29 = vpack.c.bf16 %v253_v26, %v251_v25  ;;  %v606_v30 = vpack.c.bf16 %v258_v28, %v256_v27  ;;  %v255_v31 = vld [vmem:[%s1097_s6 + $0x80] sm:$0xff]  ;;  %v257_v32 = vld [vmem:[%s1097_s6 + $0x90] sm:$0xff]  ;;  %v260_v33 = vld [vmem:[%s1097_s6 + $0xa8] sm:$0xff]  ;;  %s813_s22 = scalar_lea.vmem %s812_s4, 512  ;;  %p814_p0 = scmp.lt.s32.totalorder %s1165_s20, %s812_s4 }
  0x77   : > { %v262_v34 = vld [vmem:[%s1097_s6 + $0xb8] sm:$0xff]  ;;  %v608_v35 = vpack.c.bf16 %v257_v32, %v255_v31  ;;  %v259_v37 = vld [vmem:[%s1097_s6 + $0xa0] sm:$0xff]  ;;  %v261_v38 = vld [vmem:[%s1097_s6 + $0xb0] sm:$0xff]  ;;  %p810_p5 = pneg %p809_p2  ;;  %p815_p9 = scmp.lt.s32.totalorder %s813_s22, %s807_s29 }
  0x78   : > { %597 = vmatpush1.bf16.msra.mxu1 %v596_v17  ;;  %v610_v36 = vpack.c.bf16 %v262_v34, %v260_v33  ;;  %v264_v39 = vld [vmem:[%s1097_s6 + $0xc8] sm:$0xff]  ;;  %v266_v40 = vld [vmem:[%s1097_s6 + $0xd8] sm:$0xff]  ;;  %v612_v41 = vpack.c.bf16 %v261_v38, %v259_v37  ;;  %v263_v43 = vld [vmem:[%s1097_s6 + $0xc0] sm:$0xff] }
  0x79   : > { %599 = vmatprep.subr.bf16.mxu1 %v598_v18  ;;  %v614_v42 = vpack.c.bf16 %v266_v40, %v264_v39  ;;  %v265_v44 = vld [vmem:[%s1097_s6 + $0xd0] sm:$0xff]  ;;  %v268_v45 = vld [vmem:[%s1097_s6 + $0xe8] sm:$0xff]  ;;  %v270_v46 = vld [vmem:[%s1097_s6 + $0xf8] sm:$0xff]  ;;  %p816_p1 = por %p815_p9, %p814_p0 }
  0x7a   : > { %v616_v47 = vpack.c.bf16 %v265_v44, %v263_v43  ;;  %v618_v48 = vpack.c.bf16 %v270_v46, %v268_v45  ;;  %v267_v49 = vld [vmem:[%s1097_s6 + $0xe0] sm:$0xff]  ;;  %v269_v50 = vld [vmem:[%s1097_s6 + $0xf0] sm:$0xff]  ;;  %v272_v51 = vld [vmem:[%s1097_s6 + $0x108] sm:$0xff] }
  0x7b   : > { %v274_v52 = vld [vmem:[%s1097_s6 + $0x118] sm:$0xff]  ;;  %v620_v53 = vpack.c.bf16 %v269_v50, %v267_v49  ;;  %v271_v55 = vld [vmem:[%s1097_s6 + $0x100] sm:$0xff]  ;;  %v273_v56 = vld [vmem:[%s1097_s6 + $0x110] sm:$0xff]  ;;  %p817_p4 = pnand %p816_p1, %p810_p5 }
  0x7c   : > { %601 = vmatpush1.bf16.msra.mxu1 %v600_v23  ;;  %v622_v54 = vpack.c.bf16 %v274_v52, %v272_v51  ;;  %v276_v57 = vld [vmem:[%s1097_s6 + $0x128] sm:$0xff]  ;;  %v278_v58 = vld [vmem:[%s1097_s6 + $0x138] sm:$0xff]  ;;  %v624_v59 = vpack.c.bf16 %v273_v56, %v271_v55  ;;  %v275_v61 = vld [vmem:[%s1097_s6 + $0x120] sm:$0xff] }
  0x7d   : > { %603 = vmatprep.subr.bf16.mxu1 %v602_v24  ;;  %v626_v60 = vpack.c.bf16 %v278_v58, %v276_v57  ;;  %v277_v62 = vld [vmem:[%s1097_s6 + $0x130] sm:$0xff]  ;;  %v280_v63 = vld [vmem:[%s1097_s6 + $0x148] sm:$0xff]  ;;  %v282_v0 = vld [vmem:[%s1097_s6 + $0x158] sm:$0xff] }
  0x7e   : > { %v628_v1 = vpack.c.bf16 %v277_v62, %v275_v61  ;;  %v630_v2 = vpack.c.bf16 %v282_v0, %v280_v63  ;;  %v279_v3 = vld [vmem:[%s1097_s6 + $0x140] sm:$0xff]  ;;  %v281_v4 = vld [vmem:[%s1097_s6 + $0x150] sm:$0xff]  ;;  %v284_v5 = vld [vmem:[%s1097_s6 + $0x168] sm:$0xff] }
  0x7f   : > { %v286_v6 = vld [vmem:[%s1097_s6 + $0x178] sm:$0xff]  ;;  %v632_v7 = vpack.c.bf16 %v281_v4, %v279_v3  ;;  %v283_v9 = vld [vmem:[%s1097_s6 + $0x160] sm:$0xff]  ;;  %v285_v10 = vld [vmem:[%s1097_s6 + $0x170] sm:$0xff] }
  0x80   : > { %605 = vmatpush1.bf16.msra.mxu1 %v604_v29  ;;  %v634_v8 = vpack.c.bf16 %v286_v6, %v284_v5  ;;  %v288_v11 = vld [vmem:[%s1097_s6 + $0x188] sm:$0xff]  ;;  %v290_v12 = vld [vmem:[%s1097_s6 + $0x198] sm:$0xff]  ;;  %v636_v13 = vpack.c.bf16 %v285_v10, %v283_v9  ;;  %v287_v15 = vld [vmem:[%s1097_s6 + $0x180] sm:$0xff] }
  0x81   : > { %607 = vmatprep.subr.bf16.mxu1 %v606_v30  ;;  %v638_v14 = vpack.c.bf16 %v290_v12, %v288_v11  ;;  %v289_v16 = vld [vmem:[%s1097_s6 + $0x190] sm:$0xff]  ;;  %v292_v17 = vld [vmem:[%s1097_s6 + $0x1a8] sm:$0xff]  ;;  %v294_v18 = vld [vmem:[%s1097_s6 + $0x1b8] sm:$0xff] }
  0x82   : > { %v640_v19 = vpack.c.bf16 %v289_v16, %v287_v15  ;;  %v642_v20 = vpack.c.bf16 %v294_v18, %v292_v17  ;;  %v291_v21 = vld [vmem:[%s1097_s6 + $0x1a0] sm:$0xff]  ;;  %v293_v22 = vld [vmem:[%s1097_s6 + $0x1b0] sm:$0xff]  ;;  %v296_v23 = vld [vmem:[%s1097_s6 + $0x1c8] sm:$0xff] }
  0x83   : > { %v298_v24 = vld [vmem:[%s1097_s6 + $0x1d8] sm:$0xff]  ;;  %v644_v25 = vpack.c.bf16 %v293_v22, %v291_v21  ;;  %v295_v27 = vld [vmem:[%s1097_s6 + $0x1c0] sm:$0xff]  ;;  %v297_v28 = vld [vmem:[%s1097_s6 + $0x1d0] sm:$0xff] }
  0x84   : > { %609 = vmatpush1.bf16.msra.mxu1 %v608_v35  ;;  %v646_v26 = vpack.c.bf16 %v298_v24, %v296_v23  ;;  %v300_v29 = vld [vmem:[%s1097_s6 + $0x1e8] sm:$0xff]  ;;  %v302_v30 = vld [vmem:[%s1097_s6 + $0x1f8] sm:$0xff]  ;;  %v648_v31 = vpack.c.bf16 %v297_v28, %v295_v27  ;;  %v299_v33 = vld [vmem:[%s1097_s6 + $0x1e0] sm:$0xff] }
  0x85   : > { %611 = vmatprep.subr.bf16.mxu1 %v610_v36  ;;  %v650_v32 = vpack.c.bf16 %v302_v30, %v300_v29  ;;  %v301_v34 = vld [vmem:[%s1097_s6 + $0x1f0] sm:$0xff] }
  0x86   : > { %v652_v35 = vpack.c.bf16 %v301_v34, %v299_v33 }
  0x88   : > { %613 = vmatpush1.bf16.msra.mxu1 %v612_v41 }
  0x89   : > { %615 = vmatprep.subr.bf16.mxu1 %v614_v42 }
  0x8c   : > { %617 = vmatpush1.bf16.msra.mxu1 %v616_v47 }
  0x8d   : > { %619 = vmatprep.subr.bf16.mxu1 %v618_v48 }
  0x90   : > { %621 = vmatpush1.bf16.msra.mxu1 %v620_v53 }
  0x91   : > { %623 = vmatprep.subr.bf16.mxu1 %v622_v54 }
  0x94   : > { %625 = vmatpush1.bf16.msra.mxu1 %v624_v59 }
  0x95   : > { %627 = vmatprep.subr.bf16.mxu1 %v626_v60 }
  0x98   : > { %629 = vmatpush1.bf16.msra.mxu1 %v628_v1 }
  0x99   : > { %631 = vmatprep.subr.bf16.mxu1 %v630_v2 }
  0x9c   : > { %633 = vmatpush1.bf16.msra.mxu1 %v632_v7 }
  0x9d   : > { %635 = vmatprep.subr.bf16.mxu1 %v634_v8 }
  0xa0   : > { %637 = vmatpush1.bf16.msra.mxu1 %v636_v13 }
  0xa1   : > { %639 = vmatprep.subr.bf16.mxu1 %v638_v14 }
  0xa4   : > { %641 = vmatpush1.bf16.msra.mxu1 %v640_v19 }
  0xa5   : > { %643 = vmatprep.subr.bf16.mxu1 %v642_v20 }
  0xa8   : > { %645 = vmatpush1.bf16.msra.mxu1 %v644_v25 }
  0xa9   : > { %647 = vmatprep.subr.bf16.mxu1 %v646_v26 }
  0xac   : > { %649 = vmatpush1.bf16.msra.mxu1 %v648_v31 }
  0xad   : > { %651 = vmatprep.subr.bf16.mxu1 %v650_v32 }
  0xb0   : > { %653 = vmatpush1.bf16.msra.mxu1 %v652_v35 }
 0x144   : > { %v373_v36 = vpop.f32.mrb[0].mxu0 }
 0x145   : > { %v375_v37 = vpop.f32.mrb[1].mxu0 }
 0x146   : > { %442 = vmatprep.mubr.f32.mxu1 %v375_v37 }
 0x147   : > { %443 = vmatmul.mubr.f32.vlgmr.msra.gmra.mrb[0].mxu1 %v373_v36 }
 0x21a   : > { %v444_v38 = vpop.f32.mrb[0].mxu1 }
 0x21b   : > { %449 = vst [vmem:[%s235_s18] sm:$0xff] %v444_v38  ;;  %v446_v39 = vpop.f32.mrb[1].mxu1 }
 0x21c   : > { %450 = vst [vmem:[%s235_s18 + $0x8] sm:$0xff] %v446_v39 }
 0x21d   : > { %820 = shalt.err (!%p817_p4)
}
 0x21e   : > { %s821_s9 = scalar_lea.hbm %s1170_s28, 256  ;;  %s825_s11 = scalar_lea.hbm %s1214_s3, 1024 }
 0x21f   : > { %p822_p10 = scmp.ne.s32.totalorder %s1170_s28, %s821_s9  ;;  %p826_p3 = scmp.lt.u32.totalorder %s1170_s28, %s1214_s3 }
 0x220   : > { %p827_p13 = scmp.lt.u32.totalorder %s825_s11, %s821_s9  ;;  %p829_p6 = scmp.lt.u32.totalorder %s821_s9, %s1170_s28 }
 0x221   : > { %p823_p8 = pnand %p822_p10, %p1229_p11 }
 0x222   : > { %p828_p12 = por %p827_p13, %p826_p3 }
 0x223   : > { %p824_p7 = pneg %p823_p8 }
 0x224   : > { %p830_p2 = por %p829_p6, %p828_p12 }
 0x226   : > { %p831_p5 = pnand %p830_p2, %p824_p7 }
 0x228   : > { %834 = shalt.err (!%p831_p5)
}
 0x229   : > { %662 = dma.vmem_to_hbm [thread:$0]  (%p1229_p11), %s1165_s20, 256, %s1170_s28, %s452_s7  }
 0x22a PF: > { %p682_p0 = scmp.ge.s32.totalorder %s877_s15, 2  ;;  %s478_s6 = sand.u32 1, %s865_s12  }
 0x22b   : > { %p1230_p9 = scmp.ne.s32.totalorder %s1222_s27, 0  ;;  %s479_s25 = scalar_lea.sflag [#allocation4], %s478_s6 }
 0x22d   : > { %p676_p1 = pnand %p682_p0, %p1230_p9 }
 0x22f   : > { %860 = dma.done.wait (!%p676_p1), %s479_s25, 256  }
 0x230   : > { %862 = vsyncadd (!%p676_p1), %s479_s25, 4294967040  ;;  %p17_p4 = scmp.ge.s32.totalorder %s927_s16, 6   ;;  %s1231_s12 = smov %s869_s13 }
 0x231   : > { %s1232_s13 = smov %s873_s14  ;;  %s1233_s14 = smov %s937_s19 }
 0x232   : > { %s1234_s15 = smov %s927_s16  ;;  %19 = sbr.rel (!%p17_p4) target bundleno = 6 (0x6), region = 93 }
 0x239   :  { %484 = vsyncpa [#allocation3], 1 }
 0x23a   :  { %486 = vsyncpa [#allocation3 + $0x1], 1 }
 0x23b   :  { %487 = vsyncpa [#allocation6], 1 }
 0x23c   :  { %489 = vsyncpa [#allocation6 + $0x1], 1 }
 0x23d   :  { %490 = vsyncpa [#allocation4], 1 }
 0x23e   :  { %492 = vsyncpa [#allocation4 + $0x1], 1 }

</bundles_post_ra>
